<compile_context>
chip_gen: v7x
topology: tpu7x:2x2x1
jax: 0.10.0
libtpu: 0.0.40
codegen_flags: <defaults>
</compile_context>

<pallas_src>
import functools

import jax
import jax.numpy as jnp
import numpy as np
from jax import lax
from jax.experimental import pallas as pl
from jax.experimental.pallas import tpu as pltpu

NEG_SLOPE = 0.2      # DGL GATConv default leaky_relu negative slope
NEG_BIG = -1e30      # softmax mask sentinel (f32-safe)


def gnn_layer_kernel(adj_ref, h_ref, w_ref, al_ref, art_ref, b_ref, out_ref,
                     *, num_heads, out_size):
    """One grid step == one metapath's GATConv (all heads), eval mode.

    adj_ref: (1, N, N)      dense adjacency for this metapath (u -> v)
    h_ref:   (N, F_in)      shared node features
    w_ref:   (1, F_in, H*D) feature-transform weight
    al_ref:  (1, H*D, H)    block-diagonal attn_l  (el_cols = feat @ al)
    art_ref: (1, H, H*D)    block-diagonal attn_r^T (er_rows = art @ feat^T)
    b_ref:   (1, 1, H*D)    bias
    out_ref: (1, N, H*D)
    """
    adj = adj_ref[0]                        # (N, N)
    h = h_ref[...]                          # (N, F_in)
    w = w_ref[0]                            # (F_in, H*D)
    n = adj.shape[0]

    # ---- MXU: feature transform -------------------------------------------
    feat = jnp.dot(h, w, preferred_element_type=jnp.float32)            # (N, H*D)

    # ---- MXU: all-head attention logits, transpose-free ---------------------
    # el_cols[:, h] = <feat_h(u), attn_l_h>   -> (N_u, H)  column per head
    # er_rows[h, :] = <feat_h(v), attn_r_h>   -> (H, N_v)  row per head
    el_cols = jnp.dot(feat, al_ref[0], preferred_element_type=jnp.float32)
    er_rows = lax.dot_general(art_ref[0], feat,
                              dimension_numbers=(((1,), (1,)), ((), ())),
                              preferred_element_type=jnp.float32)

    mask = adj > 0.0
    ones_u = jnp.ones((n, 1), dtype=jnp.float32)

    head_outs = []
    for hd in range(num_heads):             # small static loop over heads
        sl = slice(hd * out_size, (hd + 1) * out_size)
        f_h = feat[:, sl]                                               # (N_u, D)

        # e[u, v] = leaky_relu(el[u] + er[v]); single -1e30 mask (post-exp
        # re-mask is redundant: masked entries underflow to exactly 0 after
        # max subtraction whenever dst v has at least one in-edge).
        e = el_cols[:, hd:hd + 1] + er_rows[hd:hd + 1, :]               # (N_u, N_v)
        e = jnp.where(e > 0, e, NEG_SLOPE * e)
        e = jnp.where(mask, e, NEG_BIG)

        e_max = jnp.max(e, axis=0, keepdims=True)                       # (1, N_v)
        p = jnp.exp(e - e_max)                                          # (N_u, N_v)

        # ---- MXU: contract over u WITHOUT materializing any transpose ------
        # acc[v, :]  = sum_u p[u, v] * f_h[u, :]
        # denom[v,0] = sum_u p[u, v]
        acc = lax.dot_general(p, f_h, (((0,), (0,)), ((), ())),
                              preferred_element_type=jnp.float32)       # (N_v, D)
        denom = lax.dot_general(p, ones_u, (((0,), (0,)), ((), ())),
                                preferred_element_type=jnp.float32)     # (N_v, 1)

        # Normalize AFTER the matmul: N_v reciprocals instead of N_u*N_v
        # divides.  EUP approx reciprocal + one Newton step keeps f32 accuracy
        # while staying off the VALU divide path.  max() guards dst nodes with
        # no in-edges (would otherwise be 0/0 = NaN).
        denom = jnp.maximum(denom, 1e-20)
        inv = pl.reciprocal(denom, approx=True)
        inv = inv * (2.0 - denom * inv)
        head_outs.append(acc * inv)                                     # (N_v, D)

    # Single lane-dense epilogue: one concat, one bias add, one ELU pass and
    # one full-width (N, H*D) store.
    out = jnp.concatenate(head_outs, axis=-1)                           # (N, H*D)
    out = out + b_ref[0]                                                # bias
    out = jnp.where(out > 0, out, jnp.exp(out) - 1.0)                   # ELU
    out_ref[0] = out


def gnn_layer(adj, h, w, attn_l, attn_r, bias, *, num_heads, out_size):
    M, N, _ = adj.shape
    f_in = h.shape[1]
    ho = num_heads * out_size

    # Block-diagonal attention matrices so the per-head attention reductions
    # become MXU matmuls inside the kernel (no kernel transposes / keepdims).
    eye_h = jnp.eye(num_heads, dtype=jnp.float32)
    # al_bd[m, h*D + d, h'] = attn_l[m, h, d] * (h == h')   -> (M, H*D, H)
    al_bd = (attn_l[:, :, :, None] * eye_h[None, :, None, :]
             ).reshape(M, ho, num_heads)
    # ar_bd_t[m, h, h'*D + d] = attn_r[m, h, d] * (h == h') -> (M, H, H*D)
    ar_bd_t = (attn_r[:, :, None, :] * eye_h[None, :, :, None]
               ).reshape(M, num_heads, ho)

    kernel = functools.partial(gnn_layer_kernel, num_heads=num_heads,
                               out_size=out_size)

    out = pl.pallas_call(
        kernel,
        out_shape=jax.ShapeDtypeStruct((M, N, ho), jnp.float32),
        grid_spec=pltpu.PrefetchScalarGridSpec(
            num_scalar_prefetch=0,
            grid=(M,),
            in_specs=[
                pl.BlockSpec((1, N, N), lambda i: (i, 0, 0)),                 # adj
                pl.BlockSpec((N, f_in), lambda i: (0, 0)),                    # h (shared)
                pl.BlockSpec((1, f_in, ho), lambda i: (i, 0, 0)),             # W
                pl.BlockSpec((1, ho, num_heads), lambda i: (i, 0, 0)),        # attn_l (block-diag)
                pl.BlockSpec((1, num_heads, ho), lambda i: (i, 0, 0)),        # attn_r^T (block-diag)
                pl.BlockSpec((1, 1, ho), lambda i: (i, 0, 0)),                # bias
            ],
            out_specs=pl.BlockSpec((1, N, ho), lambda i: (i, 0, 0)),
        ),
        compiler_params=pltpu.CompilerParams(dimension_semantics=("parallel",)),
    )(adj, h, w, al_bd, ar_bd_t, bias)

    # Metapath-major (M, N, H*D) -> (N, M, H*D) == torch.stack(..., dim=1).
    # Kept as a wrapper transpose: a (N, 1, H*D) output block over an M=3
    # sublane axis violates the (8,128) block-tiling rule, and this pass is
    # O(M*N*H*D) -- negligible next to the O(M*N^2) adjacency traffic.
    out = jnp.transpose(out, (1, 0, 2))
    return jnp.squeeze(out)                 # matches `.squeeze()` in the torch module


def gnn_layer_ref(adj, h, w, attn_l, attn_r, bias):
    """Pure-JAX reference for correctness checking."""
    M, N, _ = adj.shape
    H, D = attn_l.shape[1], attn_l.shape[2]
    outs = []
    for m in range(M):
        feat = h @ w[m]
        f3 = feat.reshape(N, H, D)
        el = jnp.sum(f3 * attn_l[m][None], -1)      # (N, H)
        er = jnp.sum(f3 * attn_r[m][None], -1)      # (N, H)
        e = el[:, None, :] + er[None, :, :]         # (Nu, Nv, H)
        e = jnp.where(e > 0, e, NEG_SLOPE * e)
        msk = (adj[m] > 0)[:, :, None]
        e = jnp.where(msk, e, -jnp.inf)
        alpha = jax.nn.softmax(e, axis=0)
        alpha = jnp.where(msk, alpha, 0.0)
        rst = jnp.einsum('uvh,uhd->vhd', alpha, f3)
        rst = rst + bias[m].reshape(1, H, D)
        rst = jax.nn.elu(rst)
        outs.append(rst.reshape(N, H * D))
    return jnp.squeeze(jnp.stack(outs, axis=1))


if __name__ == "__main__":
    # Small shapes implied by the module: M metapaths, N nodes, feature dims, heads.
    num_meta_paths = 3
    num_nodes = 16
    in_size = 8
    out_size = 8
    num_heads = 4

    key = jax.random.PRNGKey(0)
    k_adj, k_h, k_w, k_al, k_ar, k_b = jax.random.split(key, 6)

    # Dense adjacency per metapath, with self-loops so every node has in-degree >= 1.
    adj = (jax.random.uniform(k_adj, (num_meta_paths, num_nodes, num_nodes)) < 0.3)
    adj = adj.astype(jnp.float32)
    adj = jnp.maximum(adj, jnp.eye(num_nodes, dtype=jnp.float32)[None])

    h = jax.random.normal(k_h, (num_nodes, in_size), dtype=jnp.float32)

    # Deterministic parameter init (GATConv: fc weight, attn_l, attn_r, bias).
    ho = num_heads * out_size
    w = jax.random.normal(k_w, (num_meta_paths, in_size, ho), dtype=jnp.float32) * 0.1
    attn_l = jax.random.normal(k_al, (num_meta_paths, num_heads, out_size),
                               dtype=jnp.float32) * 0.1
    attn_r = jax.random.normal(k_ar, (num_meta_paths, num_heads, out_size),
                               dtype=jnp.float32) * 0.1
    bias = jax.random.normal(k_b, (num_meta_paths, 1, ho), dtype=jnp.float32) * 0.01

    out = gnn_layer(adj, h, w, attn_l, attn_r, bias,
                    num_heads=num_heads, out_size=out_size)
    out = jax.block_until_ready(out)

    ref = gnn_layer_ref(adj, h, w, attn_l, attn_r, bias)
    np.testing.assert_allclose(np.asarray(out), np.asarray(ref), rtol=1e-4, atol=1e-4)

    print("KERNEL_OK")
</pallas_src>

<mosaic_0001>
module attributes {stable_mosaic.version = 11 : i64} {
  func.func @gnn_layer_kernel(%arg0: i32, %arg1: memref<1x16x16xf32, #tpu.memory_space<vmem>>, %arg2: memref<16x8xf32, #tpu.memory_space<vmem>>, %arg3: memref<1x8x32xf32, #tpu.memory_space<vmem>>, %arg4: memref<1x32x4xf32, #tpu.memory_space<vmem>>, %arg5: memref<1x4x32xf32, #tpu.memory_space<vmem>>, %arg6: memref<1x1x32xf32, #tpu.memory_space<vmem>>, %arg7: memref<1x16x32xf32, #tpu.memory_space<vmem>>) attributes {dimension_semantics = [#tpu.dimension_semantics<parallel>], iteration_bounds = array<i64: 3>, scalar_prefetch = 0 : i64, scratch_operands = 0 : i64, tpu.core_type = #tpu.core_type<tc>, window_params = [{transform_indices = @transform_0, window_bounds = array<i64: 1, 16, 16>}, {pipeline_mode = #tpu.pipeline_mode<synchronous>, transform_indices = @transform_1, window_bounds = array<i64: 16, 8>}, {transform_indices = @transform_2, window_bounds = array<i64: 1, 8, 32>}, {transform_indices = @transform_3, window_bounds = array<i64: 1, 32, 4>}, {transform_indices = @transform_4, window_bounds = array<i64: 1, 4, 32>}, {transform_indices = @transform_5, window_bounds = array<i64: 1, 1, 32>}, {transform_indices = @transform_6, window_bounds = array<i64: 1, 16, 32>}]} {
    %c0 = arith.constant 0 : index
    %c0_0 = arith.constant 0 : index
    %c0_1 = arith.constant 0 : index
    %0 = vector.load %arg1[%c0, %c0_0, %c0_1] : memref<1x16x16xf32, #tpu.memory_space<vmem>>, vector<1x16x16xf32>
    %1 = vector.shape_cast %0 : vector<1x16x16xf32> to vector<16x16xf32>
    %c0_2 = arith.constant 0 : index
    %c0_3 = arith.constant 0 : index
    %2 = vector.load %arg2[%c0_2, %c0_3] : memref<16x8xf32, #tpu.memory_space<vmem>>, vector<16x8xf32>
    %c0_4 = arith.constant 0 : index
    %c0_5 = arith.constant 0 : index
    %c0_6 = arith.constant 0 : index
    %3 = vector.load %arg3[%c0_4, %c0_5, %c0_6] : memref<1x8x32xf32, #tpu.memory_space<vmem>>, vector<1x8x32xf32>
    %4 = vector.shape_cast %3 : vector<1x8x32xf32> to vector<8x32xf32>
    %cst = arith.constant dense<0.000000e+00> : vector<16x32xf32>
    %5 = tpu.matmul %2, %4, %cst {dimension_numbers = #tpu.dot_dimension_numbers<[1], [0], [0], [1], [0, 0, 1, 1], [], []>} : vector<16x8xf32>, vector<8x32xf32>, vector<16x32xf32> -> vector<16x32xf32>
    %c0_7 = arith.constant 0 : index
    %c0_8 = arith.constant 0 : index
    %c0_9 = arith.constant 0 : index
    %6 = vector.load %arg4[%c0_7, %c0_8, %c0_9] : memref<1x32x4xf32, #tpu.memory_space<vmem>>, vector<1x32x4xf32>
    %7 = vector.shape_cast %6 : vector<1x32x4xf32> to vector<32x4xf32>
    %cst_10 = arith.constant dense<0.000000e+00> : vector<16x4xf32>
    %8 = tpu.matmul %5, %7, %cst_10 {dimension_numbers = #tpu.dot_dimension_numbers<[1], [0], [0], [1], [0, 0, 1, 1], [], []>} : vector<16x32xf32>, vector<32x4xf32>, vector<16x4xf32> -> vector<16x4xf32>
    %c0_11 = arith.constant 0 : index
    %c0_12 = arith.constant 0 : index
    %c0_13 = arith.constant 0 : index
    %9 = vector.load %arg5[%c0_11, %c0_12, %c0_13] : memref<1x4x32xf32, #tpu.memory_space<vmem>>, vector<1x4x32xf32>
    %10 = vector.shape_cast %9 : vector<1x4x32xf32> to vector<4x32xf32>
    %cst_14 = arith.constant dense<0.000000e+00> : vector<4x16xf32>
    %11 = tpu.matmul %10, %5, %cst_14 {dimension_numbers = #tpu.dot_dimension_numbers<[1], [1], [0], [0], [0, 0, 1, 0], [], []>} : vector<4x32xf32>, vector<16x32xf32>, vector<4x16xf32> -> vector<4x16xf32>
    %cst_15 = arith.constant 0.000000e+00 : f32
    %12 = vector.broadcast %cst_15 : f32 to vector<16x16xf32>
    %13 = arith.cmpf ogt, %1, %12 : vector<16x16xf32>
    %cst_16 = arith.constant 1.000000e+00 : f32
    %14 = vector.broadcast %cst_16 : f32 to vector<16x1xf32>
    %15 = vector.extract_strided_slice %5 {offsets = [0, 0], sizes = [16, 8], strides = [1, 1]} : vector<16x32xf32> to vector<16x8xf32>
    %16 = vector.extract_strided_slice %8 {offsets = [0, 0], sizes = [16, 1], strides = [1, 1]} : vector<16x4xf32> to vector<16x1xf32>
    %17 = vector.extract_strided_slice %11 {offsets = [0, 0], sizes = [1, 16], strides = [1, 1]} : vector<4x16xf32> to vector<1x16xf32>
    %18 = vector.broadcast %16 : vector<16x1xf32> to vector<16x16xf32>
    %19 = vector.broadcast %17 : vector<1x16xf32> to vector<16x16xf32>
    %20 = arith.addf %18, %19 : vector<16x16xf32>
    %cst_17 = arith.constant 0.000000e+00 : f32
    %21 = vector.broadcast %cst_17 : f32 to vector<16x16xf32>
    %22 = arith.cmpf ogt, %20, %21 : vector<16x16xf32>
    %cst_18 = arith.constant 2.000000e-01 : f32
    %23 = vector.broadcast %cst_18 : f32 to vector<16x16xf32>
    %24 = arith.mulf %23, %20 : vector<16x16xf32>
    %25 = arith.select %22, %20, %24 : vector<16x16xi1>, vector<16x16xf32>
    %cst_19 = arith.constant -1.000000e+30 : f32
    %26 = vector.broadcast %cst_19 : f32 to vector<16x16xf32>
    %27 = arith.select %13, %25, %26 : vector<16x16xi1>, vector<16x16xf32>
    %cst_20 = arith.constant dense<0xFF800000> : vector<16xf32>
    %28 = vector.multi_reduction <maximumf>, %27, %cst_20 [0] : vector<16x16xf32> to vector<16xf32>
    %29 = vector.shape_cast %28 : vector<16xf32> to vector<1x16xf32>
    %30 = vector.broadcast %29 : vector<1x16xf32> to vector<16x16xf32>
    %31 = arith.subf %27, %30 : vector<16x16xf32>
    %32 = math.exp %31 : vector<16x16xf32>
    %cst_21 = arith.constant dense<0.000000e+00> : vector<16x8xf32>
    %33 = tpu.matmul %32, %15, %cst_21 {dimension_numbers = #tpu.dot_dimension_numbers<[0], [0], [1], [1], [0, 1, 1, 1], [], []>} : vector<16x16xf32>, vector<16x8xf32>, vector<16x8xf32> -> vector<16x8xf32>
    %cst_22 = arith.constant dense<0.000000e+00> : vector<16x1xf32>
    %34 = tpu.matmul %32, %14, %cst_22 {dimension_numbers = #tpu.dot_dimension_numbers<[0], [0], [1], [1], [0, 1, 1, 1], [], []>} : vector<16x16xf32>, vector<16x1xf32>, vector<16x1xf32> -> vector<16x1xf32>
    %cst_23 = arith.constant 9.99999968E-21 : f32
    %35 = vector.broadcast %cst_23 : f32 to vector<16x1xf32>
    %36 = arith.maximumf %34, %35 : vector<16x1xf32>
    %37 = tpu.reciprocal %36 {approx = true} : vector<16x1xf32> -> vector<16x1xf32>
    %38 = arith.mulf %36, %37 : vector<16x1xf32>
    %cst_24 = arith.constant 2.000000e+00 : f32
    %39 = vector.broadcast %cst_24 : f32 to vector<16x1xf32>
    %40 = arith.subf %39, %38 : vector<16x1xf32>
    %41 = arith.mulf %37, %40 : vector<16x1xf32>
    %42 = vector.broadcast %41 : vector<16x1xf32> to vector<16x8xf32>
    %43 = arith.mulf %33, %42 : vector<16x8xf32>
    %44 = vector.extract_strided_slice %5 {offsets = [0, 8], sizes = [16, 8], strides = [1, 1]} : vector<16x32xf32> to vector<16x8xf32>
    %45 = vector.extract_strided_slice %8 {offsets = [0, 1], sizes = [16, 1], strides = [1, 1]} : vector<16x4xf32> to vector<16x1xf32>
    %46 = vector.extract_strided_slice %11 {offsets = [1, 0], sizes = [1, 16], strides = [1, 1]} : vector<4x16xf32> to vector<1x16xf32>
    %47 = vector.broadcast %45 : vector<16x1xf32> to vector<16x16xf32>
    %48 = vector.broadcast %46 : vector<1x16xf32> to vector<16x16xf32>
    %49 = arith.addf %47, %48 : vector<16x16xf32>
    %cst_25 = arith.constant 0.000000e+00 : f32
    %50 = vector.broadcast %cst_25 : f32 to vector<16x16xf32>
    %51 = arith.cmpf ogt, %49, %50 : vector<16x16xf32>
    %cst_26 = arith.constant 2.000000e-01 : f32
    %52 = vector.broadcast %cst_26 : f32 to vector<16x16xf32>
    %53 = arith.mulf %52, %49 : vector<16x16xf32>
    %54 = arith.select %51, %49, %53 : vector<16x16xi1>, vector<16x16xf32>
    %cst_27 = arith.constant -1.000000e+30 : f32
    %55 = vector.broadcast %cst_27 : f32 to vector<16x16xf32>
    %56 = arith.select %13, %54, %55 : vector<16x16xi1>, vector<16x16xf32>
    %cst_28 = arith.constant dense<0xFF800000> : vector<16xf32>
    %57 = vector.multi_reduction <maximumf>, %56, %cst_28 [0] : vector<16x16xf32> to vector<16xf32>
    %58 = vector.shape_cast %57 : vector<16xf32> to vector<1x16xf32>
    %59 = vector.broadcast %58 : vector<1x16xf32> to vector<16x16xf32>
    %60 = arith.subf %56, %59 : vector<16x16xf32>
    %61 = math.exp %60 : vector<16x16xf32>
    %cst_29 = arith.constant dense<0.000000e+00> : vector<16x8xf32>
    %62 = tpu.matmul %61, %44, %cst_29 {dimension_numbers = #tpu.dot_dimension_numbers<[0], [0], [1], [1], [0, 1, 1, 1], [], []>} : vector<16x16xf32>, vector<16x8xf32>, vector<16x8xf32> -> vector<16x8xf32>
    %cst_30 = arith.constant dense<0.000000e+00> : vector<16x1xf32>
    %63 = tpu.matmul %61, %14, %cst_30 {dimension_numbers = #tpu.dot_dimension_numbers<[0], [0], [1], [1], [0, 1, 1, 1], [], []>} : vector<16x16xf32>, vector<16x1xf32>, vector<16x1xf32> -> vector<16x1xf32>
    %cst_31 = arith.constant 9.99999968E-21 : f32
    %64 = vector.broadcast %cst_31 : f32 to vector<16x1xf32>
    %65 = arith.maximumf %63, %64 : vector<16x1xf32>
    %66 = tpu.reciprocal %65 {approx = true} : vector<16x1xf32> -> vector<16x1xf32>
    %67 = arith.mulf %65, %66 : vector<16x1xf32>
    %cst_32 = arith.constant 2.000000e+00 : f32
    %68 = vector.broadcast %cst_32 : f32 to vector<16x1xf32>
    %69 = arith.subf %68, %67 : vector<16x1xf32>
    %70 = arith.mulf %66, %69 : vector<16x1xf32>
    %71 = vector.broadcast %70 : vector<16x1xf32> to vector<16x8xf32>
    %72 = arith.mulf %62, %71 : vector<16x8xf32>
    %73 = vector.extract_strided_slice %5 {offsets = [0, 16], sizes = [16, 8], strides = [1, 1]} : vector<16x32xf32> to vector<16x8xf32>
    %74 = vector.extract_strided_slice %8 {offsets = [0, 2], sizes = [16, 1], strides = [1, 1]} : vector<16x4xf32> to vector<16x1xf32>
    %75 = vector.extract_strided_slice %11 {offsets = [2, 0], sizes = [1, 16], strides = [1, 1]} : vector<4x16xf32> to vector<1x16xf32>
    %76 = vector.broadcast %74 : vector<16x1xf32> to vector<16x16xf32>
    %77 = vector.broadcast %75 : vector<1x16xf32> to vector<16x16xf32>
    %78 = arith.addf %76, %77 : vector<16x16xf32>
    %cst_33 = arith.constant 0.000000e+00 : f32
    %79 = vector.broadcast %cst_33 : f32 to vector<16x16xf32>
    %80 = arith.cmpf ogt, %78, %79 : vector<16x16xf32>
    %cst_34 = arith.constant 2.000000e-01 : f32
    %81 = vector.broadcast %cst_34 : f32 to vector<16x16xf32>
    %82 = arith.mulf %81, %78 : vector<16x16xf32>
    %83 = arith.select %80, %78, %82 : vector<16x16xi1>, vector<16x16xf32>
    %cst_35 = arith.constant -1.000000e+30 : f32
    %84 = vector.broadcast %cst_35 : f32 to vector<16x16xf32>
    %85 = arith.select %13, %83, %84 : vector<16x16xi1>, vector<16x16xf32>
    %cst_36 = arith.constant dense<0xFF800000> : vector<16xf32>
    %86 = vector.multi_reduction <maximumf>, %85, %cst_36 [0] : vector<16x16xf32> to vector<16xf32>
    %87 = vector.shape_cast %86 : vector<16xf32> to vector<1x16xf32>
    %88 = vector.broadcast %87 : vector<1x16xf32> to vector<16x16xf32>
    %89 = arith.subf %85, %88 : vector<16x16xf32>
    %90 = math.exp %89 : vector<16x16xf32>
    %cst_37 = arith.constant dense<0.000000e+00> : vector<16x8xf32>
    %91 = tpu.matmul %90, %73, %cst_37 {dimension_numbers = #tpu.dot_dimension_numbers<[0], [0], [1], [1], [0, 1, 1, 1], [], []>} : vector<16x16xf32>, vector<16x8xf32>, vector<16x8xf32> -> vector<16x8xf32>
    %cst_38 = arith.constant dense<0.000000e+00> : vector<16x1xf32>
    %92 = tpu.matmul %90, %14, %cst_38 {dimension_numbers = #tpu.dot_dimension_numbers<[0], [0], [1], [1], [0, 1, 1, 1], [], []>} : vector<16x16xf32>, vector<16x1xf32>, vector<16x1xf32> -> vector<16x1xf32>
    %cst_39 = arith.constant 9.99999968E-21 : f32
    %93 = vector.broadcast %cst_39 : f32 to vector<16x1xf32>
    %94 = arith.maximumf %92, %93 : vector<16x1xf32>
    %95 = tpu.reciprocal %94 {approx = true} : vector<16x1xf32> -> vector<16x1xf32>
    %96 = arith.mulf %94, %95 : vector<16x1xf32>
    %cst_40 = arith.constant 2.000000e+00 : f32
    %97 = vector.broadcast %cst_40 : f32 to vector<16x1xf32>
    %98 = arith.subf %97, %96 : vector<16x1xf32>
    %99 = arith.mulf %95, %98 : vector<16x1xf32>
    %100 = vector.broadcast %99 : vector<16x1xf32> to vector<16x8xf32>
    %101 = arith.mulf %91, %100 : vector<16x8xf32>
    %102 = vector.extract_strided_slice %5 {offsets = [0, 24], sizes = [16, 8], strides = [1, 1]} : vector<16x32xf32> to vector<16x8xf32>
    %103 = vector.extract_strided_slice %8 {offsets = [0, 3], sizes = [16, 1], strides = [1, 1]} : vector<16x4xf32> to vector<16x1xf32>
    %104 = vector.extract_strided_slice %11 {offsets = [3, 0], sizes = [1, 16], strides = [1, 1]} : vector<4x16xf32> to vector<1x16xf32>
    %105 = vector.broadcast %103 : vector<16x1xf32> to vector<16x16xf32>
    %106 = vector.broadcast %104 : vector<1x16xf32> to vector<16x16xf32>
    %107 = arith.addf %105, %106 : vector<16x16xf32>
    %cst_41 = arith.constant 0.000000e+00 : f32
    %108 = vector.broadcast %cst_41 : f32 to vector<16x16xf32>
    %109 = arith.cmpf ogt, %107, %108 : vector<16x16xf32>
    %cst_42 = arith.constant 2.000000e-01 : f32
    %110 = vector.broadcast %cst_42 : f32 to vector<16x16xf32>
    %111 = arith.mulf %110, %107 : vector<16x16xf32>
    %112 = arith.select %109, %107, %111 : vector<16x16xi1>, vector<16x16xf32>
    %cst_43 = arith.constant -1.000000e+30 : f32
    %113 = vector.broadcast %cst_43 : f32 to vector<16x16xf32>
    %114 = arith.select %13, %112, %113 : vector<16x16xi1>, vector<16x16xf32>
    %cst_44 = arith.constant dense<0xFF800000> : vector<16xf32>
    %115 = vector.multi_reduction <maximumf>, %114, %cst_44 [0] : vector<16x16xf32> to vector<16xf32>
    %116 = vector.shape_cast %115 : vector<16xf32> to vector<1x16xf32>
    %117 = vector.broadcast %116 : vector<1x16xf32> to vector<16x16xf32>
    %118 = arith.subf %114, %117 : vector<16x16xf32>
    %119 = math.exp %118 : vector<16x16xf32>
    %cst_45 = arith.constant dense<0.000000e+00> : vector<16x8xf32>
    %120 = tpu.matmul %119, %102, %cst_45 {dimension_numbers = #tpu.dot_dimension_numbers<[0], [0], [1], [1], [0, 1, 1, 1], [], []>} : vector<16x16xf32>, vector<16x8xf32>, vector<16x8xf32> -> vector<16x8xf32>
    %cst_46 = arith.constant dense<0.000000e+00> : vector<16x1xf32>
    %121 = tpu.matmul %119, %14, %cst_46 {dimension_numbers = #tpu.dot_dimension_numbers<[0], [0], [1], [1], [0, 1, 1, 1], [], []>} : vector<16x16xf32>, vector<16x1xf32>, vector<16x1xf32> -> vector<16x1xf32>
    %cst_47 = arith.constant 9.99999968E-21 : f32
    %122 = vector.broadcast %cst_47 : f32 to vector<16x1xf32>
    %123 = arith.maximumf %121, %122 : vector<16x1xf32>
    %124 = tpu.reciprocal %123 {approx = true} : vector<16x1xf32> -> vector<16x1xf32>
    %125 = arith.mulf %123, %124 : vector<16x1xf32>
    %cst_48 = arith.constant 2.000000e+00 : f32
    %126 = vector.broadcast %cst_48 : f32 to vector<16x1xf32>
    %127 = arith.subf %126, %125 : vector<16x1xf32>
    %128 = arith.mulf %124, %127 : vector<16x1xf32>
    %129 = vector.broadcast %128 : vector<16x1xf32> to vector<16x8xf32>
    %130 = arith.mulf %120, %129 : vector<16x8xf32>
    %131 = tpu.concatenate %43, %72, %101, %130 in 1 : vector<16x8xf32>, vector<16x8xf32>, vector<16x8xf32>, vector<16x8xf32> -> vector<16x32xf32>
    %c0_49 = arith.constant 0 : index
    %c0_50 = arith.constant 0 : index
    %c0_51 = arith.constant 0 : index
    %132 = vector.load %arg6[%c0_49, %c0_50, %c0_51] : memref<1x1x32xf32, #tpu.memory_space<vmem>>, vector<1x1x32xf32>
    %133 = vector.shape_cast %132 : vector<1x1x32xf32> to vector<1x32xf32>
    %134 = vector.broadcast %133 : vector<1x32xf32> to vector<16x32xf32>
    %135 = arith.addf %131, %134 : vector<16x32xf32>
    %cst_52 = arith.constant 0.000000e+00 : f32
    %136 = vector.broadcast %cst_52 : f32 to vector<16x32xf32>
    %137 = arith.cmpf ogt, %135, %136 : vector<16x32xf32>
    %138 = math.exp %135 : vector<16x32xf32>
    %cst_53 = arith.constant 1.000000e+00 : f32
    %139 = vector.broadcast %cst_53 : f32 to vector<16x32xf32>
    %140 = arith.subf %138, %139 : vector<16x32xf32>
    %141 = arith.select %137, %135, %140 : vector<16x32xi1>, vector<16x32xf32>
    %c0_54 = arith.constant 0 : index
    %c0_55 = arith.constant 0 : index
    %c0_56 = arith.constant 0 : index
    %142 = vector.load %arg7[%c0_54, %c0_55, %c0_56] : memref<1x16x32xf32, #tpu.memory_space<vmem>>, vector<1x16x32xf32>
    %143 = vector.shape_cast %142 : vector<1x16x32xf32> to vector<16x32xf32>
    %144 = vector.shape_cast %141 : vector<16x32xf32> to vector<1x16x32xf32>
    tpu.vector_store %arg7[%c0_54, %c0_55, %c0_56], %144 {strides = array<i32>} : memref<1x16x32xf32, #tpu.memory_space<vmem>>, vector<1x16x32xf32>,
    return
  }
  func.func @transform_0(%arg0: i32) -> (i32, i32, i32) {
    %c0_i32 = arith.constant 0 : i32
    %c0_i32_0 = arith.constant 0 : i32
    %c0_i32_1 = arith.constant 0 : i32
    return %arg0, %c0_i32, %c0_i32_0 : i32, i32, i32
  }
  func.func @transform_1(%arg0: i32) -> (i32, i32) {
    %c0_i32 = arith.constant 0 : i32
    %c0_i32_0 = arith.constant 0 : i32
    %c0_i32_1 = arith.constant 0 : i32
    return %c0_i32, %c0_i32_0 : i32, i32
  }
  func.func @transform_2(%arg0: i32) -> (i32, i32, i32) {
    %c0_i32 = arith.constant 0 : i32
    %c0_i32_0 = arith.constant 0 : i32
    %c0_i32_1 = arith.constant 0 : i32
    return %arg0, %c0_i32, %c0_i32_0 : i32, i32, i32
  }
  func.func @transform_3(%arg0: i32) -> (i32, i32, i32) {
    %c0_i32 = arith.constant 0 : i32
    %c0_i32_0 = arith.constant 0 : i32
    %c0_i32_1 = arith.constant 0 : i32
    return %arg0, %c0_i32, %c0_i32_0 : i32, i32, i32
  }
  func.func @transform_4(%arg0: i32) -> (i32, i32, i32) {
    %c0_i32 = arith.constant 0 : i32
    %c0_i32_0 = arith.constant 0 : i32
    %c0_i32_1 = arith.constant 0 : i32
    return %arg0, %c0_i32, %c0_i32_0 : i32, i32, i32
  }
  func.func @transform_5(%arg0: i32) -> (i32, i32, i32) {
    %c0_i32 = arith.constant 0 : i32
    %c0_i32_0 = arith.constant 0 : i32
    %c0_i32_1 = arith.constant 0 : i32
    return %arg0, %c0_i32, %c0_i32_0 : i32, i32, i32
  }
  func.func @transform_6(%arg0: i32) -> (i32, i32, i32) {
    %c0_i32 = arith.constant 0 : i32
    %c0_i32_0 = arith.constant 0 : i32
    %c0_i32_1 = arith.constant 0 : i32
    return %arg0, %c0_i32, %c0_i32_0 : i32, i32, i32
  }
}

</mosaic_0001>

<bundles_post_ra>
// kernel: tpu_custom_call.1
= control target key start
LH: loop header
LB: loop body
LE: loop exit
PB: predicated region body
PF: predicated region fallthrough
CT: control target
= control target key end

     0   :  { %11 = vsyncpa [#allocation3], 0  ;;  %s2400_s0 = inlined_call_operand.vmem [shape: f32[3,16,16], index: 0, kind: input, shape index: {}]   ;;  %s2401_s1 = inlined_call_operand.vmem [shape: f32[16,8], index: 1, kind: input, shape index: {}]   ;;  %s2402_s2 = inlined_call_operand.vmem [shape: f32[3,8,32], index: 2, kind: input, shape index: {}]   ;;  %s2403_s3 = inlined_call_operand.vmem [shape: f32[3,32,4], index: 3, kind: input, shape index: {}]   ;;  %s2404_s4 = inlined_call_operand.vmem [shape: f32[3,4,32], index: 4, kind: input, shape index: {}]   ;;  %s2405_s5 = inlined_call_operand.vmem [shape: f32[3,1,32], index: 5, kind: input, shape index: {}]   ;;  %s2406_s6 = inlined_call_operand.hbm [shape: f32[3,16,32], index: 6, kind: output, shape index: {}]  }
   0x1   :  { %13 = vsyncpa [#allocation3 + $0x1], 0  ;;  %s2181_s21 = smov 0   ;;  %s2183_s22 = smov 0  }
   0x2   :  { %s2185_s23 = smov 0   ;;  %s2187_s24 = smov 0  }
   0x3 LB: > { %s2202_s25 = sadd.s32 4294967295, %s2128_s24   ;;  %s1749_s26 = sadd.s32 4294967294, %s2128_s24   ;;  %s2128_s24 = sphi %s2187_s24, %s2412_s24   ;;  %s2124_s23 = sphi %s2185_s23, %s2411_s23   ;;  %s2120_s22 = sphi %s2183_s22, %s2410_s22   ;;  %s2116_s21 = sphi %s2181_s21, %s2409_s21  }
   0x4   : > { %s2206_s27 = sadd.s32 1, %s2128_s24   ;;  %s177_s28 = sadd.s32 1, %s2124_s23 }
   0x5   : > { %s174_s29 = ssub.s32 %s2128_s24, %s2206_s27  ;;  %p187_p0 = scmp.ne.s32.totalorder %s2124_s23, %s2120_s22 }
   0x6   : > { %p175_p1 = scmp.eq.s32.totalorder %s174_s29, 0  ;;  %p188_p2 = scmp.eq.s32.totalorder %s2202_s25, 2 }
   0x7   : > { %p193_p3 = scmp.ne.s32.totalorder %s2120_s22, %s2116_s21  ;;  %p194_p4 = scmp.eq.s32.totalorder %s1749_s26, 2 }
   0x8   : > { %s2217_s30 = scalar_select %p175_p1, %s2124_s23, %s177_s28  }
   0x9   : > { %p2219_p5 = por %p188_p2, %p187_p0  ;;  %p2223_p6 = por %p194_p4, %p193_p3 }
   0xa   : > { %p1752_p7 = scmp.ge.s32.totalorder %s2128_s24, 1  ;;  %p251_p8 = scmp.lt.s32.totalorder %s2128_s24, 4 }
   0xc   : > { %p252_p9 = pnand %p1752_p7, %p251_p8 }
   0xd   : > { %p297_p10 = scmp.lt.s32.totalorder (!%p252_p9), %s2202_s25, 2  ;;  %v320_v0 = vld [vmem:[%s2401_s1] sm:$0xff] (!%p252_p9)  ;;  %vm323_vm0 = vcmask (!%p252_p9), 64512   ;;  %v321_v1 = vld [vmem:[%s2401_s1 + $0x8] sm:$0xff] (!%p252_p9)  ;;  %v2130_v9 = vmov (!%p252_p9), 0.0|0.0   ;;  %vm2131_vm1 = vmmov (!%p252_p9), 0   ;;  %v577_v25 = vlaneseq (!%p252_p9) }
   0xe   : > { %255 = sbr.rel (%p252_p9) target bundleno = 1284 (0x504), region = 44  ;;  %1840 = vmatprep.mubr.msk.f32.mxu0 (!%p252_p9), %vm323_vm0, %v320_v0  ;;  %v2132_v10 = vmov (!%p252_p9), 0.0   ;;  %v2133_v11 = vmov (!%p252_p9), 1   ;;  %v2134_v12 = vmov (!%p252_p9), 0   ;;  %vm409_vm2 = vcmask (!%p252_p9), 261120   ;;  %s2139_s17 = smov (!%p252_p9), 104  }
   0xf   : > { %2008 = vset.pattern.permute.xlu1 (!%p252_p9), %v2133_v11  ;;  %2007 = vset.pattern.permute.xlu0 (!%p252_p9), %v2134_v12  ;;  %vm1927_vm3 = vmpackc.low (!%p252_p9), %vm409_vm2, %vm409_vm2  ;;  %v2135_v21 = vmov (!%p252_p9), 2   ;;  %v2136_v23 = vmov (!%p252_p9), 3   ;;  %v2137_v24 = vmov (!%p252_p9), 1.0|1.0   ;;  %v578_v26 = vshrl.u32 (!%p252_p9), %v577_v25, 7  ;;  %s2140_s18 = smov (!%p252_p9), 120  }
  0x10   : > { %vm591_vm7 = vcmask (!%p252_p9), 130048   ;;  %s2141_s19 = smov (!%p252_p9), 8   ;;  %s2142_s20 = smov (!%p252_p9), 16   ;;  %vm1604_vm15 = vcmask (!%p252_p9), 195584  }
  0x11   : > { %v827_v27 = vsub.s32 (!%p252_p9), 1, %v578_v26  ;;  %v579_v28 = vsub.s32 (!%p252_p9), 0, %v578_v26  ;;  %v1080_v41 = vsub.s32 (!%p252_p9), 2, %v578_v26  ;;  %v1333_v54 = vsub.s32 (!%p252_p9), 3, %v578_v26 }
  0x15   : > { %s2235_s11 = scalar_select %p297_p10, %s2202_s25, 2 }
  0x17   : > { %s1756_s12 = sshll.u32 %s2235_s11, 3  ;;  %s1792_s13 = sshll.u32 %s2235_s11, 5 }
  0x18   : > { %s305_s16 = scalar_lea.vmem %s2402_s2, %s1756_s12  ;;  %s310_s26 = scalar_lea.vmem %s2403_s3, %s1792_s13 }
  0x19   : > { %v322_v2 = vld [vmem:[%s305_s16] sm:$0xff]  ;;  %v406_v4 = vld [vmem:[%s310_s26 + $0x8] sm:$0xff]  ;;  %v407_v6 = vld [vmem:[%s310_s26 + $0x10] sm:$0xff]  ;;  %s1759_s28 = sshll.u32 %s2235_s11, 2  ;;  %s1791_s12 = sshll.u32 %s2235_s11, 4 }
  0x1a   : > { %v405_v3 = vld [vmem:[%s310_s26] sm:$0xff]  ;;  %1838 = vmatprep.subr.mxu0 %v322_v2  ;;  %v408_v7 = vld [vmem:[%s310_s26 + $0x18] sm:$0xff]  ;;  %s314_s10 = scalar_lea.vmem %s2404_s4, %s1759_s28  ;;  %s301_s15 = scalar_lea.vmem %s2400_s0, %s1791_s12 }
  0x1b   : > { %v1917_v5 = vpack.c.bf16 %v406_v4, %v405_v3  ;;  %1839 = vmatpush3.msra.mxu0 %v322_v2  ;;  %v1921_v8 = vpack.c.bf16 %v408_v7, %v407_v6  ;;  %v491_v17 = vld [vmem:[%s314_s10] sm:$0xf]  ;;  %v2272_v33 = vld [vmem:[%s301_s15 + $0x8] sm:$0xff]  ;;  %s2138_s16 = smov 112   ;;  %s2143_s26 = smov 24  }
  0x1c   : > { %1841 = vmatmul.mubr.msk.f32.vlgmr.msra.gmra.mrb[0].mxu0 %vm323_vm0, %v321_v1  ;;  %1925 = vmatprep.subr.bf16.mxu0 %v2130_v9  ;;  %vm566_vm6 = vcmp.gt.f32.partialorder %v2272_v33, 0.0  ;;  %v318_v39 = vld [vmem:[%s301_s15] sm:$0xff]  ;;  %s317_s9 = scalar_lea.vmem %s2405_s5, %s2235_s11  ;;  %s294_s11 = sand.u32 1, %s2120_s22  }
  0x1d   : > { %1918 = vmatprep.subr.bf16.mxu1 %v1917_v5  ;;  %1858 = vmatprep.mubr.msk.f32.mxu0 %vm2131_vm1, %v2132_v10  ;;  %vm565_vm8 = vcmp.gt.f32.partialorder %v318_v39, 0.0  ;;  %s1753_s10 = sshll.u32 %s294_s11, 4  ;;  %s1793_s12 = sshll.u32 %s2202_s25, 8 }
  0x1e   : > { %1920 = vmatpush3.bf16.msra.mxu1 %v1917_v5  ;;  %s296_s13 = scalar_lea.vmem [#allocation2], %s1753_s10  ;;  %s2358_s25 = scalar_lea.sflag [#allocation3], %s294_s11 }
  0x1f   : > { %1922 = vmatprep.subr.bf16.mxu1 %v1921_v8  ;;  %s1642_s14 = sshll.u32 %s296_s13, 4  ;;  %s2354_s14 = int_to_ptr.vmem [resolvable:$true] %s1642_s14 }
  0x22   : > { %1924 = vmatpush3.bf16.msra.mxu1 %v1921_v8 }
  0xef   : > { %v1842_v13 = vpop.f32.mrb[0].mxu0 }
  0xf0   : > { %v396_v14 = vpop.f32.mrb[1].mxu0 }
  0xf1   : > { %v1926_v15 = vpack.c.bf16 %v1842_v13, %v396_v14  ;;  %1851 = vmatprep.mubr.msk.f32.mxu1 %vm409_vm2, %v396_v14  ;;  %v2254_v16 = vpack.i.bf16 %v1842_v13, %v396_v14 }
  0xf2   : > { %1852 = vmatmul.mubr.msk.f32.vlgmr.msra.gmra.mrb[0].mxu1 %vm409_vm2, %v1842_v13 }
  0xf3   : > { %1928 = vmatpush3.bf16.xpose.msk.msra.mxu0 %vm1927_vm3, %v1926_v15  ;;  %1930 = vmatprep.subr.bf16.mxu1 %v1926_v15 }
  0xf4   : > { %1932 = vmatpush3.bf16.msra.mxu1 %v1926_v15  ;;  %1933 = vmatprep.subr.bf16.mxu0 %v2137_v24 }
  0xfa   : > { %1859 = vmatmul.mubr.msk.f32.vlgmr.msra.gmra.mrb[2].mxu0 %vm409_vm2, %v491_v17 }
  0xfb   : > { %1934 = vmatpush3.bf16.msra.mxu0 %v2137_v24 }
  0xfc   : > { %1939 = vmatprep.subr.bf16.mxu0 %v2137_v24 }
 0x1c5   : > { %v1853_v18 = vpop.f32.mrb[0].mxu1 }
 0x1c6   : > { %822 = vperm.xlu1 %2008, %v1853_v18   ;;  %574 = vperm.xlu0 %2007, %v1853_v18   ;;  %v482_v19 = vpop.f32.mrb[1].mxu1 }
 0x1ca   : > { %818 = vperm.xlu1 %2008, %v482_v19   ;;  %569 = vperm.xlu0 %2007, %v482_v19  }
 0x1cd   : > { %v2261_v20 = vpop.f32.mrb[2].mxu0 }
 0x1ce   : > { %2009 = vset.pattern.permute.xlu1 %v2135_v21  ;;  %2010 = vset.pattern.permute.xlu0 %v2135_v21  ;;  %v1860_v22 = vpop.f32.mrb[3].mxu0  ;;  %v828_v29 = vrot.slane %v2261_v20, %v827_v27  ;;  %v580_v30 = vrot.slane %v2261_v20, %v579_v28  ;;  %v1081_v50 = vrot.slane %v2261_v20, %v1080_v41 }
 0x1cf   : > { %1075 = vperm.xlu1 %2009, %v1853_v18   ;;  %1071 = vperm.xlu0 %2010, %v482_v19   ;;  %v1334_v4 = vrot.slane %v2261_v20, %v1333_v54 }
 0x1d3   : > { %2011 = vset.pattern.permute.xlu1 %v2136_v23  ;;  %2012 = vset.pattern.permute.xlu0 %v2136_v23 }
 0x1d4   : > { %1324 = vperm.xlu1 %2011, %v482_v19   ;;  %1328 = vperm.xlu0 %2012, %v1853_v18  }
 0x245   : > { %v823_v31 = vpop.permute.xlu1 %822  ;;  %v575_v32 = vpop.permute.xlu0 %574 }
 0x246   : > { %v830_v34 = vadd.f32 %v828_v29, %v823_v31  ;;  %v582_v35 = vadd.f32 %v580_v30, %v575_v32 }
 0x248   : > { %vm832_vm4 = vcmp.gt.f32.partialorder %v830_v34, 0.0  ;;  %v834_v36 = vmul.f32 0.2, %v830_v34  ;;  %vm584_vm5 = vcmp.gt.f32.partialorder %v582_v35, 0.0  ;;  %v586_v37 = vmul.f32 0.2, %v582_v35 }
 0x249   : > { %v819_v38 = vpop.permute.xlu1 %818  ;;  %v570_v40 = vpop.permute.xlu0 %569 }
 0x24a   : > { %v836_v42 = vsel %vm832_vm4, %v830_v34, %v834_v36  ;;  %v588_v43 = vsel %vm584_vm5, %v582_v35, %v586_v37  ;;  %v829_v44 = vadd.f32 %v828_v29, %v819_v38  ;;  %v581_v45 = vadd.f32 %v580_v30, %v570_v40 }
 0x24b   : > { %v2277_v46 = vsel %vm566_vm6, %v836_v42, -1e+30  ;;  %v2281_v48 = vsel %vm566_vm6, %v588_v43, -1e+30 }
 0x24c   : > { %vm831_vm9 = vcmp.gt.f32.partialorder %v829_v44, 0.0  ;;  %v833_v47 = vmul.f32 0.2, %v829_v44  ;;  %vm583_vm10 = vcmp.gt.f32.partialorder %v581_v45, 0.0  ;;  %v585_v49 = vmul.f32 0.2, %v581_v45 }
 0x24d   : > { %v840_v59 = vsel %vm591_vm7, %v2277_v46, -inf  ;;  %v593_v60 = vsel %vm591_vm7, %v2281_v48, -inf }
 0x24e   : > { %v835_v51 = vsel %vm831_vm9, %v829_v44, %v833_v47  ;;  %v1076_v52 = vpop.permute.xlu1 %1075  ;;  %v1072_v53 = vpop.permute.xlu0 %1071  ;;  %v587_v56 = vsel %vm583_vm10, %v581_v45, %v585_v49 }
 0x24f   : > { %v837_v55 = vsel %vm565_vm8, %v835_v51, -1e+30  ;;  %v1083_v57 = vadd.f32 %v1081_v50, %v1076_v52  ;;  %v1082_v58 = vadd.f32 %v1081_v50, %v1072_v53  ;;  %v589_v62 = vsel %vm565_vm8, %v587_v56, -1e+30 }
 0x250   : > { %v839_v61 = vsel %vm591_vm7, %v837_v55, -inf  ;;  %v592_v0 = vsel %vm591_vm7, %v589_v62, -inf }
 0x251   : > { %v841_v63 = vmax.f32 %v839_v61, %v840_v59  ;;  %vm1085_vm11 = vcmp.gt.f32.partialorder %v1083_v57, 0.0  ;;  %v1087_v1 = vmul.f32 0.2, %v1083_v57  ;;  %v594_v2 = vmax.f32 %v592_v0, %v593_v60 }
 0x252   : > { %vm1084_vm12 = vcmp.gt.f32.partialorder %v1082_v58, 0.0  ;;  %v1086_v3 = vmul.f32 0.2, %v1082_v58 }
 0x253   : > { %v842_v5 = vrot.slane %v841_v63, 4  ;;  %v1089_v6 = vsel %vm1085_vm11, %v1083_v57, %v1087_v1  ;;  %v1325_v7 = vpop.permute.xlu1 %1324  ;;  %v1329_v8 = vpop.permute.xlu0 %1328  ;;  %v595_v9 = vrot.slane %v594_v2, 4 }
 0x254   : > { %v1091_v10 = vsel %vm566_vm6, %v1089_v6, -1e+30  ;;  %v1088_v11 = vsel %vm1084_vm12, %v1082_v58, %v1086_v3  ;;  %v1335_v13 = vadd.f32 %v1334_v4, %v1325_v7  ;;  %v1336_v18 = vadd.f32 %v1334_v4, %v1329_v8 }
 0x255   : > { %v843_v14 = vmax.f32 %v841_v63, %v842_v5  ;;  %v1093_v15 = vsel %vm591_vm7, %v1091_v10, -inf  ;;  %v1090_v17 = vsel %vm565_vm8, %v1088_v11, -1e+30  ;;  %v596_v19 = vmax.f32 %v594_v2, %v595_v9 }
 0x256   : > { %v1092_v21 = vsel %vm591_vm7, %v1090_v17, -inf  ;;  %vm1337_vm13 = vcmp.gt.f32.partialorder %v1335_v13, 0.0  ;;  %v1339_v20 = vmul.f32 0.2, %v1335_v13  ;;  %vm1338_vm14 = vcmp.gt.f32.partialorder %v1336_v18, 0.0 }
 0x257   : > { %v844_v22 = vrot.slane %v843_v14, 2  ;;  %v1094_v23 = vmax.f32 %v1092_v21, %v1093_v15  ;;  %v1340_v25 = vmul.f32 0.2, %v1336_v18  ;;  %v597_v26 = vrot.slane %v596_v19, 2 }
 0x258   : > { %v1341_v27 = vsel %vm1337_vm13, %v1335_v13, %v1339_v20 }
 0x259   : > { %v845_v28 = vmax.f32 %v843_v14, %v844_v22  ;;  %v1095_v29 = vrot.slane %v1094_v23, 4  ;;  %v1343_v30 = vsel %vm565_vm8, %v1341_v27, -1e+30  ;;  %v1342_v31 = vsel %vm1338_vm14, %v1336_v18, %v1340_v25 }
 0x25a   : > { %v598_v32 = vmax.f32 %v596_v19, %v597_v26  ;;  %v1345_v34 = vsel %vm591_vm7, %v1343_v30, -inf  ;;  %v1344_v35 = vsel %vm566_vm6, %v1342_v31, -1e+30 }
 0x25b   : > { %v846_v36 = vrot.slane %v845_v28, 1  ;;  %v1096_v37 = vmax.f32 %v1094_v23, %v1095_v29  ;;  %v1346_v38 = vsel %vm591_vm7, %v1344_v35, -inf }
 0x25c   : > { %v599_v40 = vrot.slane %v598_v32, 1  ;;  %v1347_v41 = vmax.f32 %v1345_v34, %v1346_v38 }
 0x25d   : > { %v847_v42 = vmax.f32 %v845_v28, %v846_v36  ;;  %v1097_v43 = vrot.slane %v1096_v37, 2 }
 0x25e   : > { %v600_v44 = vmax.f32 %v598_v32, %v599_v40  ;;  %v1348_v45 = vrot.slane %v1347_v41, 4 }
 0x25f   : > { %v848_v47 = vsub.f32 %v837_v55, %v847_v42  ;;  %v849_v39 = vsub.f32 %v2277_v46, %v847_v42  ;;  %v1098_v49 = vmax.f32 %v1096_v37, %v1097_v43 }
 0x260   : > { %v601_v50 = vsub.f32 %v589_v62, %v600_v44  ;;  %v1349_v51 = vmax.f32 %v1347_v41, %v1348_v45  ;;  %v602_v33 = vsub.f32 %v2281_v48, %v600_v44 }
 0x261   : > { %v850_v52 = vmul.f32 1.442695, %v848_v47  ;;  %v1099_v53 = vrot.slane %v1098_v49, 1  ;;  %v852_v57 = vmul.f32 1.442695, %v849_v39 }
 0x262   : > { %v603_v54 = vmul.f32 1.442695, %v601_v50  ;;  %v1350_v56 = vrot.slane %v1349_v51, 2  ;;  %v605_v60 = vmul.f32 1.442695, %v602_v33 }
 0x263   : > { %2030 = vpow2.f32 %v850_v52  ;;  %v1100_v58 = vmax.f32 %v1098_v49, %v1099_v53 }
 0x264   : > { %v1351_v59 = vmax.f32 %v1349_v51, %v1350_v56  ;;  %2032 = vpow2.f32 %v603_v54 }
 0x265   : > { %v1101_v61 = vsub.f32 %v1090_v17, %v1100_v58  ;;  %2034 = vpow2.f32 %v852_v57  ;;  %v1102_v55 = vsub.f32 %v1091_v10, %v1100_v58 }
 0x266   : > { %v1352_v63 = vrot.slane %v1351_v59, 1  ;;  %2036 = vpow2.f32 %v605_v60 }
 0x267   : > { %v1103_v46 = vmul.f32 1.442695, %v1101_v61  ;;  %v1105_v48 = vmul.f32 1.442695, %v1102_v55 }
 0x268   : > { %v1353_v0 = vmax.f32 %v1351_v59, %v1352_v63 }
 0x269   : > { %2038 = vpow2.f32 %v1103_v46 }
 0x26a   : > { %v1354_v62 = vsub.f32 %v1343_v30, %v1353_v0  ;;  %v1355_v1 = vsub.f32 %v1344_v35, %v1353_v0 }
 0x26c   : > { %v1356_v2 = vmul.f32 1.442695, %v1354_v62  ;;  %v1358_v4 = vmul.f32 1.442695, %v1355_v1 }
 0x26d   : > { %v2031_v3 = vpop.eup %2030 }
 0x26e   : > { %2040 = vpow2.f32 %v1356_v2  ;;  %854 = vxpose.xlu0.b32.start [1/2] (short) (narrow) %v2031_v3, 16  ;;  %v2033_v5 = vpop.eup %2032 }
 0x26f   : > { %2042 = vpow2.f32 %v1105_v48  ;;  %607 = vxpose.xlu1.b32.start [1/2] (short) (narrow) %v2033_v5, 16  ;;  %v2035_v6 = vpop.eup %2034 }
 0x270   : > { %2044 = vpow2.f32 %v1358_v4  ;;  %v2037_v7 = vpop.eup %2036 }
 0x272   : > { %855 = vxpose.xlu0.b32.end [2/2] (short) (narrow) %v2035_v6, 16 }
 0x273   : > { %608 = vxpose.xlu1.b32.end [2/2] (short) (narrow) %v2037_v7, 16  ;;  %v2039_v8 = vpop.eup %2038 }
 0x276   : > { %1107 = vxpose.xlu0.b32.start [1/2] (short) (narrow) %v2039_v8, 16 }
 0x278   : > { %v2041_v9 = vpop.eup %2040 }
 0x279   : > { %v2043_v10 = vpop.eup %2042  ;;  %1360 = vxpose.xlu1.b32.start [1/2] (short) (narrow) %v2041_v9, 16 }
 0x27a   : > { %1108 = vxpose.xlu0.b32.end [2/2] (short) (narrow) %v2043_v10, 16  ;;  %v2045_v11 = vpop.eup %2044 }
 0x27d   : > { %1361 = vxpose.xlu1.b32.end [2/2] (short) (narrow) %v2045_v11, 16 }
 0x29b   : > { %2019 = vrot.lane.b32.xlu1 %v2254_v16, %s2138_s16 }
 0x29c   : > { %2029 = vset.pattern.permute.xlu1 %v2134_v12 }
 0x29f   : > { %2024 = vrot.lane.b32.xlu1 %v2254_v16, %s2139_s17  ;;  %s2352_s17 = scalar_lea.hbm %s2406_s6, %s1793_s12 }
 0x2a3   : > { %2014 = vrot.lane.b32.xlu0 %v2254_v16, %s2140_s18  ;;  %s2066_s18 = scalar_lea.vmem %s2354_s14, 256 }
 0x2a4   : > { %2028 = vset.pattern.permute.xlu0 %v2134_v12  ;;  %p2067_p11 = scmp.ne.s32.totalorder %s2354_s14, %s2066_s18 }
 0x2a6   : > { %p2068_p12 = pnand %p2067_p11, %p2219_p5 }
 0x2a8   : > { %p2069_p13 = pneg %p2068_p12 }
 0x2ee   : > { %v870_v13 = vpop.trf.xlu0 }
 0x2ef   : > { %v623_v14 = vpop.trf.xlu1 }
 0x2f0   : > { %1865 = vmatprep.mubr.msk.f32.mxu1 %vm591_vm7, %v623_v14  ;;  %1872 = vmatprep.mubr.msk.f32.mxu0 %vm591_vm7, %v623_v14 }
 0x2f2   : > { %v871_v15 = vpop.trf.xlu0 }
 0x2f3   : > { %v624_v17 = vpop.trf.xlu1 }
 0x2f4   : > { %1866 = vmatmul.mubr.msk.f32.vlgmr.msra.gmra.mrb[2].mxu1 %vm591_vm7, %v624_v17  ;;  %1873 = vmatmul.mubr.msk.f32.vlgmr.msra.gmra.mrb[4].mxu0 %vm591_vm7, %v624_v17 }
 0x2f5   : > { %1940 = vmatpush3.bf16.msra.mxu0 %v2137_v24  ;;  %1879 = vmatprep.mubr.msk.f32.mxu1 %vm591_vm7, %v870_v13 }
 0x2f6   : > { %v1123_v18 = vpop.trf.xlu0  ;;  %1886 = vmatprep.mubr.msk.f32.mxu0 %vm591_vm7, %v870_v13  ;;  %1945 = vmatprep.subr.bf16.mxu0 %v2137_v24 }
 0x2f8   : > { %1887 = vmatmul.mubr.msk.f32.vlgmr.msra.gmra.mrb[6].mxu0 %vm591_vm7, %v871_v15 }
 0x2f9   : > { %v1376_v12 = vpop.trf.xlu1  ;;  %1946 = vmatpush3.bf16.msra.mxu0 %v2137_v24  ;;  %1900 = vmatprep.mubr.msk.f32.mxu0 %vm591_vm7, %v1123_v18 }
 0x2fa   : > { %v1124_v16 = vpop.trf.xlu0  ;;  %1951 = vmatprep.subr.bf16.mxu0 %v2137_v24 }
 0x2fc   : > { %1901 = vmatmul.mubr.msk.f32.vlgmr.msra.gmra.mrb[8].mxu0 %vm591_vm7, %v1124_v16 }
 0x2fd   : > { %1952 = vmatpush3.bf16.msra.mxu0 %v2137_v24  ;;  %1914 = vmatprep.mubr.msk.f32.mxu0 %vm591_vm7, %v1376_v12  ;;  %v1377_v19 = vpop.trf.xlu1 }
 0x300   : > { %1915 = vmatmul.mubr.msk.f32.vlgmr.msra.gmra.mrb[10].mxu0 %vm591_vm7, %v1377_v19 }
 0x30d   : > { %v2020_v21 = vpop.permute.xlu1 %2019 }
 0x30e   : > { %v2022_v22 = vunpack.i.h.bf16 %v2020_v21  ;;  %v2021_v23 = vunpack.i.l.bf16 %v2020_v21 }
 0x310   : > { %v1941_v29 = vpack.c.bf16 %v2022_v22, %v2021_v23 }
 0x311   : > { %v2025_v27 = vpop.permute.xlu1 %2024 }
 0x312   : > { %v2027_v30 = vunpack.i.h.bf16 %v2025_v27  ;;  %v2026_v31 = vunpack.i.l.bf16 %v2025_v27 }
 0x314   : > { %v1947_v24 = vpack.c.bf16 %v2027_v30, %v2026_v31 }
 0x315   : > { %v2015_v20 = vpop.permute.xlu0 %2014 }
 0x316   : > { %v2017_v25 = vunpack.i.h.bf16 %v2015_v20  ;;  %v2016_v26 = vunpack.i.l.bf16 %v2015_v20 }
 0x318   : > { %v1935_v28 = vpack.c.bf16 %v2017_v25, %v2016_v26 }
 0x31a   : > { %1936 = vmatprep.subr.bf16.mxu1 %v1935_v28 }
 0x31b   : > { %1938 = vmatpush3.bf16.msra.mxu1 %v1935_v28 }
 0x31c   : > { %1942 = vmatprep.subr.bf16.mxu1 %v1941_v29 }
 0x31e   : > { %1880 = vmatmul.mubr.msk.f32.vlgmr.msra.gmra.mrb[4].mxu1 %vm591_vm7, %v871_v15 }
 0x31f   : > { %1944 = vmatpush3.bf16.msra.mxu1 %v1941_v29  ;;  %1893 = vmatprep.mubr.msk.f32.mxu1 %vm591_vm7, %v1123_v18 }
 0x320   : > { %1948 = vmatprep.subr.bf16.mxu1 %v1947_v24 }
 0x322   : > { %1894 = vmatmul.mubr.msk.f32.vlgmr.msra.gmra.mrb[6].mxu1 %vm591_vm7, %v1124_v16 }
 0x323   : > { %1950 = vmatpush3.bf16.msra.mxu1 %v1947_v24  ;;  %1907 = vmatprep.mubr.msk.f32.mxu1 %vm591_vm7, %v1376_v12 }
 0x326   : > { %1908 = vmatmul.mubr.msk.f32.vlgmr.msra.gmra.mrb[8].mxu1 %vm591_vm7, %v1377_v19 }
 0x3c7   : > { %v2331_v32 = vpop.f32.mrb[2].mxu1  ;;  %v1874_v34 = vpop.f32.mrb[4].mxu0 }
 0x3c8   : > { %v2333_v35 = vpop.f32.mrb[3].mxu1  ;;  %v786_v36 = vpop.f32.mrb[5].mxu0  ;;  %v796_v49 = vmax.f32 %v1874_v34, 1e-20 }
 0x3c9   : > { %v795_v45 = vmax.f32 %v786_v36, 1e-20 }
 0x3cb   : > { %v1888_v37 = vpop.f32.mrb[6].mxu0 }
 0x3cc   : > { %v1049_v38 = vmax.f32 %v1888_v37, 1e-20  ;;  %v1039_v40 = vpop.f32.mrb[7].mxu0 }
 0x3cd   : > { %v1048_v41 = vmax.f32 %v1039_v40, 1e-20 }
 0x3ce   : > { %2046 = vrcp.f32 %v1049_v38 }
 0x3cf   : > { %2048 = vrcp.f32 %v1048_v41  ;;  %v1902_v42 = vpop.f32.mrb[8].mxu0 }
 0x3d0   : > { %v1302_v43 = vmax.f32 %v1902_v42, 1e-20  ;;  %v1292_v44 = vpop.f32.mrb[9].mxu0 }
 0x3d1   : > { %v1301_v47 = vmax.f32 %v1292_v44, 1e-20 }
 0x3d2   : > { %2050 = vrcp.f32 %v1302_v43 }
 0x3d3   : > { %2052 = vrcp.f32 %v1301_v47  ;;  %v1916_v39 = vpop.f32.mrb[10].mxu0 }
 0x3d4   : > { %v1555_v50 = vmax.f32 %v1916_v39, 1e-20  ;;  %v1545_v51 = vpop.f32.mrb[11].mxu0  ;;  %2054 = vrcp.f32 %v795_v45 }
 0x3d5   : > { %v1554_v52 = vmax.f32 %v1545_v51, 1e-20  ;;  %v1783_v51 = vld [vmem:[%s317_s9] ss:$0 sm:$0xff] }
 0x3d6   : > { %2056 = vrcp.f32 %v1555_v50 }
 0x3d7   : > { %2058 = vrcp.f32 %v1554_v52 }
 0x3d8   : > { %v2047_v33 = vpop.eup %2046  ;;  %2060 = vrcp.f32 %v796_v49 }
 0x3d9   : > { %v2049_v53 = vpop.eup %2048  ;;  %v1053_v54 = vmul.f32 %v2047_v33, %v1049_v38 }
 0x3da   : > { %v1052_v56 = vmul.f32 %v2049_v53, %v1048_v41 }
 0x3db   : > { %v1055_v57 = vsub.f32 2.0, %v1053_v54 }
 0x3dc   : > { %v2051_v58 = vpop.eup %2050  ;;  %v1054_v59 = vsub.f32 2.0, %v1052_v56 }
 0x3dd   : > { %v2053_v60 = vpop.eup %2052  ;;  %v1306_v61 = vmul.f32 %v2051_v58, %v1302_v43  ;;  %v1057_v63 = vmul.f32 %v2047_v33, %v1055_v57 }
 0x3de   : > { %v1305_v55 = vmul.f32 %v2053_v60, %v1301_v47  ;;  %v1056_v46 = vmul.f32 %v2049_v53, %v1054_v59  ;;  %v2055_v0 = vpop.eup %2054 }
 0x3df   : > { %v1308_v62 = vsub.f32 2.0, %v1306_v61  ;;  %1065 = vperm.xlu0 %2028, %v1057_v63   ;;  %v799_v4 = vmul.f32 %v2055_v0, %v795_v45 }
 0x3e0   : > { %v2057_v1 = vpop.eup %2056  ;;  %1060 = vperm.xlu1 %2029, %v1056_v46   ;;  %v1307_v5 = vsub.f32 2.0, %v1305_v55 }
 0x3e1   : > { %v2059_v48 = vpop.eup %2058  ;;  %v1310_v2 = vmul.f32 %v2051_v58, %v1308_v62  ;;  %v1559_v6 = vmul.f32 %v2057_v1, %v1555_v50  ;;  %v801_v10 = vsub.f32 2.0, %v799_v4 }
 0x3e2   : > { %v2061_v3 = vpop.eup %2060  ;;  %v1558_v7 = vmul.f32 %v2059_v48, %v1554_v52  ;;  %v1309_v13 = vmul.f32 %v2053_v60, %v1307_v5 }
 0x3e3   : > { %v800_v9 = vmul.f32 %v2061_v3, %v796_v49  ;;  %v1561_v11 = vsub.f32 2.0, %v1559_v6  ;;  %v803_v18 = vmul.f32 %v2055_v0, %v801_v10 }
 0x3e4   : > { %v1560_v8 = vsub.f32 2.0, %v1558_v7  ;;  %1318 = vperm.xlu1 %2029, %v1310_v2  }
 0x3e5   : > { %v802_v15 = vsub.f32 2.0, %v800_v9  ;;  %v1563_v17 = vmul.f32 %v2057_v1, %v1561_v11 }
 0x3e6   : > { %v1562_v14 = vmul.f32 %v2059_v48, %v1560_v8 }
 0x3e7   : > { %v804_v12 = vmul.f32 %v2061_v3, %v802_v15 }
 0x3e8   : > { %1313 = vperm.xlu1 %2029, %v1309_v13   ;;  %1566 = vperm.xlu0 %2028, %v1562_v14  }
 0x3ec   : > { %1571 = vperm.xlu1 %2029, %v1563_v17   ;;  %807 = vperm.xlu0 %2028, %v803_v18  }
 0x3f0   : > { %812 = vperm.xlu1 %2029, %v804_v12  }
 0x3f1   : > { %v1881_v16 = vpop.f32.mrb[4].mxu1 }
 0x3f2   : > { %v964_v19 = vpop.f32.mrb[5].mxu1 }
 0x3f5   : > { %v1895_v21 = vpop.f32.mrb[6].mxu1 }
 0x3f6   : > { %v1217_v20 = vpop.f32.mrb[7].mxu1 }
 0x3f9   : > { %v1909_v22 = vpop.f32.mrb[8].mxu1 }
 0x3fa   : > { %v1470_v23 = vpop.f32.mrb[9].mxu1 }
 0x45e   : > { %v1066_v25 = vpop.permute.xlu0 %1065 }
 0x45f   : > { %v1069_v26 = vmul.f32 %v1881_v16, %v1066_v25  ;;  %v1061_v27 = vpop.permute.xlu1 %1060 }
 0x460   : > { %v1068_v28 = vmul.f32 %v1061_v27, %v964_v19 }
 0x461   : > { %1580 = vrot.lane.b32.xlu1 %v1069_v26, %s2141_s19 }
 0x462   : > { %1578 = vrot.lane.b32.xlu0 %v1068_v28, %s2141_s19 }
 0x463   : > { %v1319_v29 = vpop.permute.xlu1 %1318 }
 0x464   : > { %v1322_v30 = vmul.f32 %v1895_v21, %v1319_v29 }
 0x466   : > { %1588 = vrot.lane.b32.xlu1 %v1322_v30, %s2142_s20 }
 0x467   : > { %v1314_v31 = vpop.permute.xlu1 %1313  ;;  %v1567_v34 = vpop.permute.xlu0 %1566 }
 0x468   : > { %v1321_v24 = vmul.f32 %v1314_v31, %v1217_v20  ;;  %v1574_v37 = vmul.f32 %v1567_v34, %v1470_v23 }
 0x46a   : > { %1586 = vrot.lane.b32.xlu0 %v1321_v24, %s2142_s20  ;;  %s2144_s20 = smov [#allocation2]  }
 0x46b   : > { %v1572_v36 = vpop.permute.xlu1 %1571  ;;  %v808_v41 = vpop.permute.xlu0 %807 }
 0x46c   : > { %v1575_v38 = vmul.f32 %v1909_v22, %v1572_v36  ;;  %v815_v47 = vmul.f32 %v808_v41, %v2333_v35 }
 0x46e   : > { %1596 = vrot.lane.b32.xlu1 %v1575_v38, %s2143_s26  ;;  %1594 = vrot.lane.b32.xlu0 %v1574_v37, %s2143_s26  ;;  %s2070_s26 = sshll.u32 %s2144_s20, 4  ;;  %s2071_s26 = int_to_ptr.vmem [resolvable:$false] %s2070_s26 }
 0x46f   : > { %v813_v40 = vpop.permute.xlu1 %812  ;;  %s2072_s28 = scalar_lea.vmem %s2071_s26, 512  ;;  %p2073_p0 = scmp.lt.s32.totalorder %s2354_s14, %s2071_s26 }
 0x470   : > { %v816_v39 = vmul.f32 %v2331_v32, %v813_v40  ;;  %p2074_p1 = scmp.lt.s32.totalorder %s2072_s28, %s2066_s18 }
 0x472   : > { %p2075_p2 = por %p2074_p1, %p2073_p0 }
 0x474   : > { %p2076_p3 = pnand %p2075_p2, %p2069_p13 }
 0x4d3   : > { %v1581_v42 = vpop.permute.xlu1 %1580 }
 0x4d4   : > { %v1579_v43 = vpop.permute.xlu0 %1578  ;;  %v1601_v49 = vsel %vm323_vm0, %v816_v39, %v1581_v42 }
 0x4d5   : > { %v1600_v50 = vsel %vm323_vm0, %v815_v47, %v1579_v43 }
 0x4d8   : > { %v1589_v44 = vpop.permute.xlu1 %1588 }
 0x4d9   : > { %v1603_v52 = vsel %vm591_vm7, %v1601_v49, %v1589_v44 }
 0x4dc   : > { %v1587_v45 = vpop.permute.xlu0 %1586 }
 0x4dd   : > { %v1602_v33 = vsel %vm591_vm7, %v1600_v50, %v1587_v45 }
 0x4e0   : > { %v1597_v53 = vpop.permute.xlu1 %1596  ;;  %v1595_v54 = vpop.permute.xlu0 %1594 }
 0x4e1   : > { %v1606_v56 = vsel %vm1604_vm15, %v1603_v52, %v1597_v53  ;;  %v1605_v57 = vsel %vm1604_vm15, %v1602_v33, %v1595_v54 }
 0x4e2   : > { %v1615_v58 = vadd.f32 %v1783_v51, %v1606_v56  ;;  %v1614_v35 = vadd.f32 %v1783_v51, %v1605_v57 }
 0x4e4   : > { %v1620_v59 = vmul.f32 1.442695, %v1615_v58  ;;  %v1618_v32 = vmul.f32 1.442695, %v1614_v35  ;;  %vm1617_vm0 = vcmp.gt.f32.partialorder %v1615_v58, 0.0  ;;  %vm1616_vm1 = vcmp.gt.f32.partialorder %v1614_v35, 0.0 }
 0x4e6   : > { %2062 = vpow2.f32 %v1620_v59 }
 0x4e7   : > { %2064 = vpow2.f32 %v1618_v32 }
 0x4f0   : > { %v2063_v60 = vpop.eup %2062 }
 0x4f1   : > { %v2065_v61 = vpop.eup %2064  ;;  %v1785_v63 = vadd.f32 -1.0, %v2063_v60 }
 0x4f2   : > { %v1784_v55 = vadd.f32 -1.0, %v2065_v61 }
 0x4f3   : > { %v1625_v46 = vsel %vm1617_vm0, %v1615_v58, %v1785_v63 }
 0x4f4   : > { %1627 = vst.msk [vmem:[%s296_s13 + $0x8] sm:$0xff] %vm409_vm2, %v1625_v46  ;;  %v1624_v0 = vsel %vm1616_vm1, %v1614_v35, %v1784_v55 }
 0x4f5   : > { %1626 = vst.msk [vmem:[%s296_s13] sm:$0xff] %vm409_vm2, %v1624_v0 }
 0x4f6   : > { %2079 = shalt.err (!%p2076_p3)
}
 0x4f7   : > { %s2080_s29 = scalar_lea.hbm %s2352_s17, 256  ;;  %s2084_s10 = scalar_lea.hbm %s2406_s6, 768 }
 0x4f8   : > { %p2081_p4 = scmp.ne.s32.totalorder %s2352_s17, %s2080_s29  ;;  %p2085_p9 = scmp.lt.u32.totalorder %s2352_s17, %s2406_s6 }
 0x4f9   : > { %p2086_p10 = scmp.lt.u32.totalorder %s2084_s10, %s2080_s29  ;;  %p2088_p12 = scmp.lt.u32.totalorder %s2080_s29, %s2352_s17 }
 0x4fa   : > { %p2082_p7 = pnand %p2081_p4, %p2219_p5 }
 0x4fb   : > { %p2087_p11 = por %p2086_p10, %p2085_p9 }
 0x4fc   : > { %p2083_p8 = pneg %p2082_p7 }
 0x4fd   : > { %p2089_p13 = por %p2088_p12, %p2087_p11 }
 0x4ff   : > { %p2090_p0 = pnand %p2089_p13, %p2083_p8 }
 0x501   : > { %2093 = shalt.err (!%p2090_p0)
}
 0x502   : > { %s2145_s15 = smov 128  }
 0x503   : > { %1953 = dma.vmem_to_hbm [thread:$0]  (%p2219_p5), %s2354_s14, 256, %s2352_s17, %s2358_s25, %s2145_s15, %s2145_s15, %s2141_s19  }
 0x504 PF: > { %p1959_p1 = scmp.ge.s32.totalorder %s2128_s24, 2  ;;  %s1657_s16 = sand.u32 1, %s2116_s21  }
 0x505   : > { %s1658_s18 = scalar_lea.sflag [#allocation3], %s1657_s16 }
 0x506   : > { %p1956_p2 = pnand %p1959_p1, %p2223_p6 }
 0x508   : > { %2111 = dma.done.wait (!%p1956_p2), %s1658_s18, 256  }
 0x509   : > { %2113 = vsyncadd (!%p1956_p2), %s1658_s18, 4294967040  ;;  %p16_p3 = scmp.ge.s32.totalorder %s2206_s27, 5   ;;  %s2409_s21 = smov %s2120_s22 }
 0x50a   : > { %s2410_s22 = smov %s2124_s23  ;;  %s2411_s23 = smov %s2217_s30 }
 0x50b   : > { %s2412_s24 = smov %s2206_s27  ;;  %18 = sbr.rel (!%p16_p3) target bundleno = 3 (0x3), region = 91 }
 0x512   :  { %1663 = vsyncpa [#allocation3], 1 }
 0x513   :  { %1665 = vsyncpa [#allocation3 + $0x1], 1 }

</bundles_post_ra>
